<compile_context>
chip_gen: v7x
topology: tpu7x:2x2x1
jax: 0.10.0
libtpu: 0.0.40
codegen_flags: <defaults>
</compile_context>

<pallas_src>
import functools

import numpy as np

import jax
import jax.numpy as jnp
from jax.experimental import pallas as pl
from jax.experimental.pallas import tpu as pltpu

_EPS = 1e-9
_LANE = 128


def _cdiv(a, b):
    return -(-a // b)


def _ent_loss_kernel(x_ref, o_ref, acc_ref, *, tile_rows, acc_sub, num_tiles,
                     tiles_per_split, last_tile_rows, has_extra):
    split = pl.program_id(0)
    i = pl.program_id(1)
    tile = split * tiles_per_split + i

    # Zero the per-split vector accumulator at the start of each split.
    @pl.when(i == 0)
    def _():
        acc_ref[...] = jnp.zeros_like(acc_ref)

    def _accumulate(mask_tail):
        x = x_ref[...].astype(jnp.float32)      # cast in-kernel (VPU)
        ent = x * jnp.log(x + _EPS)             # EUP log + VPU mul
        if mask_tail:
            # Only the single genuinely ragged final tile: zero rows past the
            # true row count so garbage from the over-extended block read
            # cannot poison the sum.  `last_tile_rows` is a static Python int,
            # so this is one iota + one compare + one select on one tile only.
            local_row = jax.lax.broadcasted_iota(jnp.int32, ent.shape, 0)
            ent = jnp.where(local_row < last_tile_rows, ent, 0.0)
        # Fold (tile_rows, 128) -> (acc_sub, 128) with sublane-aligned VPU
        # adds; the single XLU reduce to a scalar is deferred to the last step.
        acc_ref[...] += jnp.sum(
            ent.reshape(tile_rows // acc_sub, acc_sub, _LANE), axis=0)

    ragged = last_tile_rows != tile_rows        # static Python bool
    if ragged:
        # Fast unmasked path for all full tiles of this split.
        @pl.when(tile < num_tiles - 1)
        def _():
            _accumulate(False)

        # Masked path only for the one ragged tile.  Clamped duplicate tiles
        # (tile >= num_tiles) match neither branch and are skipped entirely.
        @pl.when(tile == num_tiles - 1)
        def _():
            _accumulate(True)
    elif has_extra:
        # No ragged tile, but the last split has clamped duplicate tiles.
        @pl.when(tile < num_tiles)
        def _():
            _accumulate(False)
    else:
        # Grid exactly covers the input: no per-step guard at all.
        _accumulate(False)

    # Single cross-lane/cross-sublane reduction per split, on its last step.
    @pl.when(i == pl.num_programs(1) - 1)
    def _():
        o_ref[0, 0] = -jnp.sum(acc_ref[...])


def ent_loss(x):
    """-sum(x * log(x + 1e-9)) over all elements, computed in Pallas."""
    n = x.size
    if n == 0:
        return jnp.float32(0.0)

    itemsize = int(np.dtype(x.dtype).itemsize)
    flat = x.reshape(-1)                        # free reshape, original dtype

    # ---- chip-dependent knobs (trace-time) --------------------------------
    try:
        kind = jax.devices()[0].device_kind.lower()
    except Exception:  # pragma: no cover - defensive
        kind = ""
    is_v7x = ("tpu" in kind) and ("7" in kind)  # 2 TensorCores per chip
    num_splits = 2 if is_v7x else 1             # v5e/v6e: pure serial -> 1
    # f32 bytes per block: 2 MiB (v5e/v6e) / 4 MiB (v7x); keep the same DMA
    # byte size for narrower dtypes by scaling the row count.
    base_rows = 8192 if is_v7x else 4096
    big_tile_rows = base_rows * max(1, 4 // itemsize)

    # ---- lane-tail handling ------------------------------------------------
    rows = _cdiv(n, _LANE)
    pad = rows * _LANE - n
    if pad:
        # 0 * log(0 + eps) == 0 exactly, so padded lanes contribute nothing.
        # allow_input_fusion (set below) lets XLA fuse this pad into the
        # custom call instead of a full extra HBM round trip.
        flat = jnp.pad(flat, (0, pad))
    x2d = flat.reshape(rows, _LANE)

    # ---- tiling ------------------------------------------------------------
    if rows <= big_tile_rows:
        # Small input: a single full-extent tile (legal for any row count).
        tile_rows = rows
    else:
        tile_rows = big_tile_rows

    # Accumulator depth: 32 sublanes when possible (independent VALU chains),
    # falling back so that tile_rows % acc_sub == 0 always holds.
    for cand in (32, 16, 8):
        if tile_rows % cand == 0:
            acc_sub = cand
            break
    else:
        acc_sub = tile_rows

    num_tiles = _cdiv(rows, tile_rows)
    tiles_per_split = _cdiv(num_tiles, num_splits)
    has_extra = num_splits * tiles_per_split != num_tiles
    last_tile_rows = rows - (num_tiles - 1) * tile_rows

    def in_map(c, i):
        # Clamp so trailing (empty) tiles of the last split re-read the final
        # valid block; their compute is skipped in-kernel.
        return (jnp.minimum(c * tiles_per_split + i, num_tiles - 1), 0)

    kernel = functools.partial(
        _ent_loss_kernel,
        tile_rows=tile_rows,
        acc_sub=acc_sub,
        num_tiles=num_tiles,
        tiles_per_split=tiles_per_split,
        last_tile_rows=last_tile_rows,
        has_extra=has_extra,
    )

    if num_splits == 2:
        # Shard the stream across v7x's two TensorCores.
        split_sem = getattr(pltpu, "CORE_PARALLEL", "parallel")
        dim_sems = (split_sem, getattr(pltpu, "ARBITRARY", "arbitrary"))
    else:
        dim_sems = ("arbitrary", "arbitrary")

    cp_kwargs = dict(
        dimension_semantics=dim_sems,
        vmem_limit_bytes=32 * 1024 * 1024,
    )
    if pad:
        cp_kwargs["allow_input_fusion"] = [True]

    out = pl.pallas_call(
        kernel,
        out_shape=jax.ShapeDtypeStruct((num_splits, 1), jnp.float32),
        grid_spec=pltpu.PrefetchScalarGridSpec(
            num_scalar_prefetch=0,
            grid=(num_splits, tiles_per_split),
            in_specs=[pl.BlockSpec((tile_rows, _LANE), in_map)],
            out_specs=pl.BlockSpec((1, 1), lambda c, i: (c, 0),
                                   memory_space=pltpu.SMEM),
            scratch_shapes=[pltpu.VMEM((acc_sub, _LANE), jnp.float32)],
        ),
        compiler_params=pltpu.CompilerParams(**cp_kwargs),
        cost_estimate=pl.CostEstimate(
            flops=3 * n, transcendentals=n,
            bytes_accessed=n * itemsize + 4 * num_splits),
    )(x2d)

    # Combine per-split partial losses (each already negated).
    return jnp.sum(out)


if __name__ == "__main__":
    key = jax.random.PRNGKey(0)
    # Small NCHW tensor consistent with the module's typical usage
    # (softmax-like probabilities, strictly positive).
    x = jax.random.uniform(key, (2, 4, 16, 16), dtype=jnp.float32)

    loss = jax.jit(ent_loss)(x)
    loss = jax.block_until_ready(loss)

    # Reference check in plain JAX (mirrors the PyTorch forward).
    ref = -jnp.sum(x * jnp.log(x + _EPS))
    assert jnp.allclose(loss, ref, rtol=1e-5, atol=1e-5), (loss, ref)

    print("KERNEL_OK")
</pallas_src>

<mosaic_0001>
module attributes {stable_mosaic.version = 11 : i64} {
  func.func @_ent_loss_kernel(%arg0: i32, %arg1: i32, %arg2: memref<16x128xf32, #tpu.memory_space<vmem>>, %arg3: memref<1x1xf32, #tpu.memory_space<smem>>, %arg4: memref<16x128xf32, #tpu.memory_space<vmem>>) attributes {dimension_semantics = [#tpu.dimension_semantics<arbitrary>, #tpu.dimension_semantics<arbitrary>], iteration_bounds = array<i64: 1, 1>, scalar_prefetch = 0 : i64, scratch_operands = 1 : i64, tpu.core_type = #tpu.core_type<tc>, window_params = [{transform_indices = @transform_0, window_bounds = array<i64: 16, 128>}, {transform_indices = @transform_1, window_bounds = array<i64: 1, 1>}]} {
    %c0_i32 = arith.constant 0 : i32
    %0 = arith.cmpi eq, %arg1, %c0_i32 : i32
    %1 = arith.extui %0 : i1 to i32
    %c0_i32_0 = arith.constant 0 : i32
    %2 = arith.cmpi ne, %1, %c0_i32_0 : i32
    scf.if %2 {
      %cst_9 = arith.constant 0.000000e+00 : f32
      %16 = vector.broadcast %cst_9 : f32 to vector<16x128xf32>
      %c0_10 = arith.constant 0 : index
      %c0_11 = arith.constant 0 : index
      %17 = vector.load %arg4[%c0_10, %c0_11] : memref<16x128xf32, #tpu.memory_space<vmem>>, vector<16x128xf32>
      tpu.vector_store %arg4[%c0_10, %c0_11], %16 {strides = array<i32>} : memref<16x128xf32, #tpu.memory_space<vmem>>, vector<16x128xf32>,
    } else {
    }
    %c0 = arith.constant 0 : index
    %c0_1 = arith.constant 0 : index
    %3 = vector.load %arg2[%c0, %c0_1] : memref<16x128xf32, #tpu.memory_space<vmem>>, vector<16x128xf32>
    %cst = arith.constant 9.99999971E-10 : f32
    %4 = vector.broadcast %cst : f32 to vector<16x128xf32>
    %5 = arith.addf %3, %4 : vector<16x128xf32>
    %6 = math.log %5 : vector<16x128xf32>
    %7 = arith.mulf %3, %6 : vector<16x128xf32>
    %c0_2 = arith.constant 0 : index
    %c0_3 = arith.constant 0 : index
    %8 = vector.load %arg4[%c0_2, %c0_3] : memref<16x128xf32, #tpu.memory_space<vmem>>, vector<16x128xf32>
    %9 = vector.shape_cast %7 : vector<16x128xf32> to vector<1x16x128xf32>
    %cst_4 = arith.constant dense<0.000000e+00> : vector<16x128xf32>
    %10 = vector.multi_reduction <add>, %9, %cst_4 [0] : vector<1x16x128xf32> to vector<16x128xf32>
    %11 = arith.addf %8, %10 : vector<16x128xf32>
    %c0_5 = arith.constant 0 : index
    %c0_6 = arith.constant 0 : index
    %12 = vector.load %arg4[%c0_5, %c0_6] : memref<16x128xf32, #tpu.memory_space<vmem>>, vector<16x128xf32>
    tpu.vector_store %arg4[%c0_5, %c0_6], %11 {strides = array<i32>} : memref<16x128xf32, #tpu.memory_space<vmem>>, vector<16x128xf32>,
    %c0_i32_7 = arith.constant 0 : i32
    %13 = arith.cmpi eq, %arg1, %c0_i32_7 : i32
    %14 = arith.extui %13 : i1 to i32
    %c0_i32_8 = arith.constant 0 : i32
    %15 = arith.cmpi ne, %14, %c0_i32_8 : i32
    scf.if %15 {
      %c0_9 = arith.constant 0 : index
      %c0_10 = arith.constant 0 : index
      %16 = vector.load %arg4[%c0_9, %c0_10] : memref<16x128xf32, #tpu.memory_space<vmem>>, vector<16x128xf32>
      %17 = vector.shape_cast %16 : vector<16x128xf32> to vector<1x16x128xf32>
      %cst_11 = arith.constant dense<0.000000e+00> : vector<1xf32>
      %18 = vector.multi_reduction <add>, %17, %cst_11 [1, 2] : vector<1x16x128xf32> to vector<1xf32>
      %19 = vector.shape_cast %18 : vector<1xf32> to vector<1x1x1xf32>
      %20 = vector.extract %19[0, 0, 0] : f32 from vector<1x1x1xf32>
      %cst_12 = arith.constant 0.000000e+00 : f32
      %21 = arith.subf %cst_12, %20 : f32
      %c0_13 = arith.constant 0 : index
      %c0_14 = arith.constant 0 : index
      %22 = memref.load %arg3[%c0_13, %c0_14] : memref<1x1xf32, #tpu.memory_space<smem>>
      memref.store %21, %arg3[%c0_13, %c0_14] : memref<1x1xf32, #tpu.memory_space<smem>>
    } else {
    }
    return
  }
  func.func @transform_0(%arg0: i32, %arg1: i32) -> (i32, i32) {
    %c1_i32 = arith.constant 1 : i32
    %0 = arith.muli %arg0, %c1_i32 : i32
    %1 = arith.addi %0, %arg1 : i32
    %c0_i32 = arith.constant 0 : i32
    %2 = arith.minsi %1, %c0_i32 : i32
    %c0_i32_0 = arith.constant 0 : i32
    %c0_i32_1 = arith.constant 0 : i32
    return %2, %c0_i32_0 : i32, i32
  }
  func.func @transform_1(%arg0: i32, %arg1: i32) -> (i32, i32) {
    %c0_i32 = arith.constant 0 : i32
    %c0_i32_0 = arith.constant 0 : i32
    return %arg0, %c0_i32 : i32, i32
  }
}

</mosaic_0001>

<bundles_post_ra>
// kernel: ent_loss.1
= control target key start
LH: loop header
LB: loop body
LE: loop exit
PB: predicated region body
PF: predicated region fallthrough
CT: control target
= control target key end

     0   :  { %s150_s0 = inlined_call_operand.vmem [shape: f32[16,128], index: 0, kind: input, shape index: {}]   ;;  %s151_s1 = inlined_call_operand.hbm [shape: f32[1,1], index: 1, kind: output, shape index: {}]  }
   0x1   :  { %v47_v0 = vld [vmem:[%s150_s0] sm:$0xff]  ;;  %v48_v1 = vld [vmem:[%s150_s0 + $0x8] sm:$0xff] }
   0x2   :  { %6 = vsyncpa [#allocation4], 0  ;;  %v49_v2 = vadd.f32 1e-09, %v47_v0  ;;  %v50_v3 = vadd.f32 1e-09, %v48_v1 }
   0x3   :  { %s109_s13 = scalar_lea.hbm %s151_s1, 16 }
   0x4   :  { %105 = vlog2.f32 %v49_v2  ;;  %p110_p0 = scmp.ne.s32.totalorder %s151_s1, %s109_s13  ;;  %p113_p1 = scmp.lt.u32.totalorder %s109_s13, %s151_s1 }
   0x5   :  { %107 = vlog2.f32 %v50_v3 }
   0x6   :  { %p115_p2 = pnand %p113_p1, %p110_p0 }
   0xe   :  { %v106_v4 = vpop.eup %105 }
   0xf   :  { %v108_v5 = vpop.eup %107  ;;  %v52_v6 = vmul.f32 0.6931472, %v106_v4 }
  0x10   :  { %v54_v7 = vmul.f32 0.6931472, %v108_v5 }
  0x11   :  { %v55_v8 = vmul.f32 %v52_v6, %v47_v0 }
  0x12   :  { %v56_v9 = vmul.f32 %v54_v7, %v48_v1 }
  0x14   :  { %v70_v10 = vadd.f32 %v56_v9, %v55_v8 }
  0x16   :  { %71 = vadd.xlane.f32.xlu0 %v70_v10 }
  0xa3   :  { %v72_v11 = vpop.xlane.xlu0 %71 }
  0xa4   :  { %v73_v12 = vrot.slane %v72_v11, 4 }
  0xa6   :  { %v74_v13 = vadd.f32 %v73_v12, %v72_v11 }
  0xa8   :  { %v75_v14 = vrot.slane %v74_v13, 2 }
  0xaa   :  { %v76_v15 = vadd.f32 %v75_v14, %v74_v13 }
  0xac   :  { %v77_v16 = vrot.slane %v76_v15, 1 }
  0xae   :  { %v78_v17 = vadd.f32 %v77_v16, %v76_v15 }
  0xb0   :  { %102 = vpush %v78_v17 }
  0xe1   :  { %s103_s0 = spop %102 }
  0xe2   :  { %s80_s10 = ssub.f32 0.0, %s103_s0 }
  0xe4   :  { %82 = sst [smem:[#allocation3]] %s80_s10 }
  0xe5   :  { %118 = shalt.err (!%p115_p2)
}
  0xe6   :  { %s121_s18 = smov [#allocation3]  }
  0xe7   :  { %90 = dma.smem_to_hbm %s121_s18, 16, %s151_s1, [#allocation4]  }
  0xe8   :  { %119 = dma.done.wait [#allocation4], 16  }
  0xe9   :  { %120 = vsyncadd [#allocation4], 4294967280 }
  0xea   :  { %94 = sfence }
  0xeb   :  { %95 = vsyncpa [#allocation4], 1 }

</bundles_post_ra>
